<compile_context>
chip_gen: v7x
topology: tpu7x:2x2x1
jax: 0.10.0
libtpu: 0.0.40
codegen_flags: <defaults>
</compile_context>

<pallas_src>
import functools

import jax
import jax.numpy as jnp
from jax import lax
from jax.experimental import pallas as pl
from jax.experimental.pallas import tpu as pltpu

LANES = 1024            # slab width: 8 vregs wide, lane-dense multiple of 128
MAX_BLOCK_ROWS = 256    # 256 x 1024 x 4 B = 1 MiB per f32 block
ALIGN = 8 * LANES       # flatten/pad granularity -> rows always a multiple of 8


def _hash_u32(idx, offset):
    """lowbias32-style integer hash; `idx` uint32 vector, `offset` uint32 scalar."""
    h = idx + offset
    h = h ^ (h >> 16)
    h = h * jnp.uint32(0x7FEB352D)
    h = h ^ (h >> 15)
    h = h * jnp.uint32(0x846CA68B)
    h = h ^ (h >> 16)
    return h


def _dropout_kernel(seed_ref, x_ref, o_ref, *, thresh, scale, block_rows, lanes):
    """Inverted dropout on one (block_rows, lanes) tile.

    seed_ref : SMEM scalar-prefetch ref, shape (1,) int32
    x_ref    : VMEM input tile
    o_ref    : VMEM output tile
    """
    i = pl.program_id(0)

    # Global flat index of every element in this block (tiling-invariant RNG).
    row = lax.broadcasted_iota(jnp.int32, (block_rows, lanes), 0)
    col = lax.broadcasted_iota(jnp.int32, (block_rows, lanes), 1)
    local = (row * lanes + col).astype(jnp.uint32)

    base = i.astype(jnp.uint32) * jnp.uint32(block_rows * lanes)
    seed = seed_ref[0].astype(jnp.uint32)
    offset = base + seed * jnp.uint32(0x9E3779B9)   # scalar mix of block + seed

    bits = _hash_u32(local, offset)
    keep = bits >= jnp.uint32(thresh)               # keep with prob (1 - p)

    x = x_ref[...]
    o_ref[...] = jnp.where(
        keep,
        x * jnp.asarray(scale, dtype=x.dtype),      # scale in native dtype
        jnp.zeros((), dtype=x.dtype),
    )


def _pallas_dropout(x, p, seed):
    """Apply inverted dropout to an arbitrary-shaped array via the Pallas kernel."""
    orig_shape = x.shape
    dtype = x.dtype
    n = int(x.size)
    if n == 0:
        return x

    flat = x.reshape(-1)
    pad = (-n) % ALIGN
    if pad:  # only for ragged sizes; pad is < 8192 elements
        flat = jnp.pad(flat, (0, pad))
    rows = (n + pad) // LANES                    # multiple of 8 by construction
    x2d = flat.reshape(rows, LANES)

    block_rows = min(MAX_BLOCK_ROWS, rows)       # multiple of 8, <= rows
    grid = pl.cdiv(rows, block_rows)             # last block edge-masked by Pallas

    thresh = min(int(round(float(p) * (1 << 32))), (1 << 32) - 1)
    scale = 1.0 / (1.0 - float(p))
    seed_arr = jnp.asarray([seed], dtype=jnp.int32)

    kernel = functools.partial(
        _dropout_kernel,
        thresh=thresh,
        scale=scale,
        block_rows=block_rows,
        lanes=LANES,
    )

    out2d = pl.pallas_call(
        kernel,
        out_shape=jax.ShapeDtypeStruct((rows, LANES), dtype),
        grid_spec=pltpu.PrefetchScalarGridSpec(
            num_scalar_prefetch=1,
            grid=(grid,),
            in_specs=[pl.BlockSpec((block_rows, LANES), lambda i, seed: (i, 0))],
            out_specs=pl.BlockSpec((block_rows, LANES), lambda i, seed: (i, 0)),
        ),
        compiler_params=pltpu.CompilerParams(
            dimension_semantics=("parallel",),
        ),
    )(seed_arr, x2d)

    out = out2d.reshape(-1)
    if pad:
        out = out[:n]
    return out.reshape(orig_shape)


class MixedDropout:
    """JAX/Pallas port of the PyTorch MixedDropout module.

    Dense inputs  -> nn.Dropout(p) semantics (inverted dropout, identity in eval).
    Sparse inputs -> dropout applied only to the values of the COO tensor
                     (indices and dense shape pass through), matching
                     SparseDropout.forward.
    """

    # TODO(synk): torch's .coalesce() (deduplicating COO indices) has no clean
    # Pallas equivalent here; the sparse path assumes an already-coalesced COO.

    def __init__(self, p):
        self.p = float(p)
        self.training = True

    def __call__(self, x=None, *, seed=0, sparse=None):
        if sparse is not None:
            # sparse = (indices, values, dense_shape) -- COO, already coalesced.
            indices, values, shape = sparse
            if (not self.training) or self.p == 0.0:
                return (indices, values, shape)
            if self.p >= 1.0:
                return (indices, jnp.zeros_like(values), shape)
            return (indices, _pallas_dropout(values, self.p, seed), shape)
        # dense path
        if (not self.training) or self.p == 0.0:
            return x
        if self.p >= 1.0:
            return jnp.zeros_like(x)
        return _pallas_dropout(x, self.p, seed)


if __name__ == "__main__":
    key = jax.random.PRNGKey(0)
    k_dense, k_vals, k_idx = jax.random.split(key, 3)

    p = 0.5
    module = MixedDropout(p)

    # ---- dense path: NCHW input, small shapes ----
    x = jax.random.normal(k_dense, (2, 4, 16, 16), dtype=jnp.float32)
    y = module(x, seed=0)
    y = jax.block_until_ready(y)

    # sanity: kept entries are exactly x / (1 - p), dropped entries are 0
    kept = y != 0.0
    scale = 1.0 / (1.0 - p)
    assert y.shape == x.shape and y.dtype == x.dtype
    assert bool(jnp.all(jnp.where(kept, jnp.abs(y - x * scale), jnp.abs(y)) < 1e-5))
    frac_kept = float(jnp.mean(kept.astype(jnp.float32)))
    assert 0.3 < frac_kept < 0.7  # loose check that dropout actually happened

    # eval mode -> identity
    module.training = False
    y_eval = jax.block_until_ready(module(x, seed=0))
    assert bool(jnp.all(y_eval == x))
    module.training = True

    # ---- sparse path: COO (indices, values, shape) ----
    nnz = 64
    dense_shape = (32, 32)
    indices = jnp.stack(
        [
            jax.random.randint(k_idx, (nnz,), 0, dense_shape[0]),
            jax.random.randint(jax.random.fold_in(k_idx, 1), (nnz,), 0, dense_shape[1]),
        ],
        axis=0,
    )
    values = jax.random.normal(k_vals, (nnz,), dtype=jnp.float32)
    s_indices, s_values, s_shape = module(sparse=(indices, values, dense_shape), seed=1)
    s_values = jax.block_until_ready(s_values)
    assert s_values.shape == values.shape and s_shape == dense_shape
    assert bool(jnp.all(s_indices == indices))
    s_kept = s_values != 0.0
    assert bool(
        jnp.all(
            jnp.where(s_kept, jnp.abs(s_values - values * scale), jnp.abs(s_values))
            < 1e-5
        )
    )

    print("KERNEL_OK")
</pallas_src>

<mosaic_0001>
module attributes {stable_mosaic.version = 11 : i64} {
  func.func @_dropout_kernel(%arg0: i32, %arg1: memref<1xi32, #tpu.memory_space<smem>>, %arg2: memref<8x1024xf32, #tpu.memory_space<vmem>>, %arg3: memref<8x1024xf32, #tpu.memory_space<vmem>>) attributes {dimension_semantics = [#tpu.dimension_semantics<parallel>], iteration_bounds = array<i64: 1>, scalar_prefetch = 1 : i64, scratch_operands = 0 : i64, tpu.core_type = #tpu.core_type<tc>, window_params = [{transform_indices = @transform_0, window_bounds = array<i64: 8, 1024>}, {transform_indices = @transform_1, window_bounds = array<i64: 8, 1024>}]} {
    %0 = tpu.iota {dimensions = array<i32: 0>} : vector<8x1024xi32>
    %1 = tpu.iota {dimensions = array<i32: 1>} : vector<8x1024xi32>
    %c1024_i32 = arith.constant 1024 : i32
    %2 = vector.broadcast %c1024_i32 : i32 to vector<8x1024xi32>
    %3 = arith.muli %0, %2 : vector<8x1024xi32>
    %4 = arith.addi %3, %1 : vector<8x1024xi32>
    %c8192_i32 = arith.constant 8192 : i32
    %5 = arith.muli %arg0, %c8192_i32 : i32
    %c0 = arith.constant 0 : index
    %6 = memref.load %arg1[%c0] : memref<1xi32, #tpu.memory_space<smem>>
    %c-1640531527_i32 = arith.constant -1640531527 : i32
    %7 = arith.muli %6, %c-1640531527_i32 : i32
    %8 = arith.addi %5, %7 : i32
    %9 = vector.broadcast %8 : i32 to vector<8x1024xi32>
    %10 = arith.addi %4, %9 : vector<8x1024xi32>
    %c16_i32 = arith.constant 16 : i32
    %11 = vector.broadcast %c16_i32 : i32 to vector<8x1024xi32>
    %12 = arith.shrui %10, %11 : vector<8x1024xi32>
    %13 = arith.xori %10, %12 : vector<8x1024xi32>
    %c2146121005_i32 = arith.constant 2146121005 : i32
    %14 = vector.broadcast %c2146121005_i32 : i32 to vector<8x1024xi32>
    %15 = arith.muli %13, %14 : vector<8x1024xi32>
    %c15_i32 = arith.constant 15 : i32
    %16 = vector.broadcast %c15_i32 : i32 to vector<8x1024xi32>
    %17 = arith.shrui %15, %16 : vector<8x1024xi32>
    %18 = arith.xori %15, %17 : vector<8x1024xi32>
    %c-2073254261_i32 = arith.constant -2073254261 : i32
    %19 = vector.broadcast %c-2073254261_i32 : i32 to vector<8x1024xi32>
    %20 = arith.muli %18, %19 : vector<8x1024xi32>
    %c16_i32_0 = arith.constant 16 : i32
    %21 = vector.broadcast %c16_i32_0 : i32 to vector<8x1024xi32>
    %22 = arith.shrui %20, %21 : vector<8x1024xi32>
    %23 = arith.xori %20, %22 : vector<8x1024xi32>
    %c-2147483648_i32 = arith.constant -2147483648 : i32
    %24 = vector.broadcast %c-2147483648_i32 : i32 to vector<8x1024xi32>
    %25 = arith.cmpi uge, %23, %24 : vector<8x1024xi32>
    %c0_1 = arith.constant 0 : index
    %c0_2 = arith.constant 0 : index
    %26 = vector.load %arg2[%c0_1, %c0_2] : memref<8x1024xf32, #tpu.memory_space<vmem>>, vector<8x1024xf32>
    %cst = arith.constant 2.000000e+00 : f32
    %27 = vector.broadcast %cst : f32 to vector<8x1024xf32>
    %28 = arith.mulf %26, %27 : vector<8x1024xf32>
    %cst_3 = arith.constant 0.000000e+00 : f32
    %29 = vector.broadcast %cst_3 : f32 to vector<8x1024xf32>
    %30 = arith.select %25, %28, %29 : vector<8x1024xi1>, vector<8x1024xf32>
    %c0_4 = arith.constant 0 : index
    %c0_5 = arith.constant 0 : index
    %31 = vector.load %arg3[%c0_4, %c0_5] : memref<8x1024xf32, #tpu.memory_space<vmem>>, vector<8x1024xf32>
    tpu.vector_store %arg3[%c0_4, %c0_5], %30 {strides = array<i32>} : memref<8x1024xf32, #tpu.memory_space<vmem>>, vector<8x1024xf32>,
    return
  }
  func.func @transform_0(%arg0: i32, %arg1: memref<1xi32, #tpu.memory_space<smem>>) -> (i32, i32) {
    %c0_i32 = arith.constant 0 : i32
    %c0_i32_0 = arith.constant 0 : i32
    return %arg0, %c0_i32 : i32, i32
  }
  func.func @transform_1(%arg0: i32, %arg1: memref<1xi32, #tpu.memory_space<smem>>) -> (i32, i32) {
    %c0_i32 = arith.constant 0 : i32
    %c0_i32_0 = arith.constant 0 : i32
    return %arg0, %c0_i32 : i32, i32
  }
}

</mosaic_0001>

<bundles_post_ra>
// kernel: tpu_custom_call.1
= control target key start
LH: loop header
LB: loop body
LE: loop exit
PB: predicated region body
PF: predicated region fallthrough
CT: control target
= control target key end

     0   :  { %8 = vsyncpa [#allocation5], 0  ;;  %s287_s0 = inlined_call_operand.<no memory space> [shape: s32[1], index: 0, kind: input, shape index: {}]   ;;  %s288_s1 = inlined_call_operand.hbm [shape: f32[8,1024], index: 1, kind: input, shape index: {}]   ;;  %s289_s2 = inlined_call_operand.hbm [shape: f32[8,1024], index: 2, kind: output, shape index: {}]  }
   0x1   :  { %9 = vsyncpa [#allocation6], 0  ;;  %s225_s9 = smov [#allocation4]   ;;  %s177_s13 = scalar_lea.hbm %s288_s1, 1024 }
   0x2   :  { %s16_s10 = sshll.u32 %s225_s9, 4  ;;  %p178_p0 = scmp.ne.s32.totalorder %s288_s1, %s177_s13  ;;  %s17_s10 = int_to_ptr.vmem [resolvable:$true] %s16_s10 }
   0x3   :  { %p181_p1 = scmp.lt.u32.totalorder %s177_s13, %s288_s1 }
   0x5   :  { %p183_p2 = pnand %p181_p1, %p178_p0 }
   0x7   :  { %186 = shalt.err (!%p183_p2)
}
   0x8   :  { %s187_s18 = scalar_lea.vmem %s17_s10, 1024  ;;  %p192_p4 = scmp.lt.s32.totalorder %s17_s10, %s17_s10 }
   0x9   :  { %p188_p3 = scmp.ne.s32.totalorder %s17_s10, %s187_s18  ;;  %p193_p5 = scmp.lt.s32.totalorder %s187_s18, %s187_s18 }
   0xb   :  { %p194_p6 = por %p193_p5, %p192_p4 }
   0xd   :  { %p195_p7 = pnand %p194_p6, %p188_p3 }
   0xf   :  { %198 = shalt.err (!%p195_p7)
}
  0x10   :  { %19 = dma.hbm_to_vmem [thread:$0]  %s288_s1, 1024, %s17_s10, [#allocation5]  }
  0x11   :  { %221 = dma.done.wait [#allocation5], 1024  }
  0x12   :  { %222 = vsyncadd [#allocation5], 4294966272  ;;  %v23_v0 = vlaneseq  ;;  %s45_s23 = smul.u32 2654435769, %s287_s0  ;;  %v128_v16 = vld [vmem:[#allocation4] sm:$0xff]  ;;  %v129_v17 = vld [vmem:[#allocation4 + $0x8] sm:$0xff] }
  0x13   :  { %v130_v18 = vld [vmem:[#allocation4 + $0x10] sm:$0xff]  ;;  %v257_v23 = vmul.f32 2.0, %v128_v16  ;;  %v131_v25 = vld [vmem:[#allocation4 + $0x18] sm:$0xff]  ;;  %v132_v26 = vld [vmem:[#allocation4 + $0x20] sm:$0xff]  ;;  %v259_v28 = vmul.f32 2.0, %v129_v17  ;;  %s226_s0 = smov [#allocation7]  }
  0x14   :  { %v24_v1 = vshrl.u32 %v23_v0, 7  ;;  %v26_v2 = vand.u32 127, %v23_v0  ;;  %v47_v3 = vstv %s45_s23  ;;  %v261_v30 = vmul.f32 2.0, %v130_v18  ;;  %v133_v36 = vld [vmem:[#allocation4 + $0x28] sm:$0xff]  ;;  %s166_s1 = sshll.u32 %s226_s0, 4  ;;  %s167_s1 = int_to_ptr.vmem [resolvable:$true] %s166_s1 }
  0x15   :  { %v263_v34 = vmul.f32 2.0, %v131_v25  ;;  %v265_v39 = vmul.f32 2.0, %v132_v26  ;;  %v267_v48 = vmul.f32 2.0, %v133_v36  ;;  %s199_s24 = scalar_lea.vmem %s167_s1, 1024  ;;  %p204_p9 = scmp.lt.s32.totalorder %s167_s1, %s167_s1 }
  0x16   :  { %v34_v4 = vmul.u32 1024, %v24_v1  ;;  %v27_v5 = vadd.s32 128, %v26_v2  ;;  %v28_v6 = vadd.s32 256, %v26_v2  ;;  %v29_v7 = vadd.s32 384, %v26_v2  ;;  %p200_p8 = scmp.ne.s32.totalorder %s167_s1, %s199_s24  ;;  %p205_p10 = scmp.lt.s32.totalorder %s199_s24, %s199_s24 }
  0x17   :  { %v30_v8 = vadd.s32 512, %v26_v2  ;;  %v31_v9 = vadd.s32 640, %v26_v2  ;;  %v32_v10 = vadd.s32 768, %v26_v2  ;;  %v33_v11 = vadd.s32 896, %v26_v2 }
  0x18   :  { %v35_v12 = vadd.s32 %v34_v4, %v26_v2  ;;  %v36_v13 = vadd.s32 %v34_v4, %v27_v5  ;;  %v37_v14 = vadd.s32 %v34_v4, %v28_v6  ;;  %v38_v15 = vadd.s32 %v34_v4, %v29_v7  ;;  %v134_v6 = vld [vmem:[#allocation4 + $0x30] sm:$0xff]  ;;  %p206_p11 = por %p205_p10, %p204_p9 }
  0x19   :  { %v39_v19 = vadd.s32 %v34_v4, %v30_v8  ;;  %v40_v20 = vadd.s32 %v34_v4, %v31_v9  ;;  %v41_v21 = vadd.s32 %v34_v4, %v32_v10  ;;  %v42_v27 = vadd.s32 %v34_v4, %v33_v11 }
  0x1a   :  { %v48_v22 = vadd.s32 %v47_v3, %v35_v12  ;;  %v49_v24 = vadd.s32 %v47_v3, %v36_v13  ;;  %v50_v29 = vadd.s32 %v47_v3, %v37_v14  ;;  %v51_v31 = vadd.s32 %v47_v3, %v38_v15  ;;  %p207_p12 = pnand %p206_p11, %p200_p8 }
  0x1b   :  { %v52_v35 = vadd.s32 %v47_v3, %v39_v19  ;;  %v53_v40 = vadd.s32 %v47_v3, %v40_v20  ;;  %v54_v44 = vadd.s32 %v47_v3, %v41_v21  ;;  %v55_v56 = vadd.s32 %v47_v3, %v42_v27 }
  0x1c   :  { %v56_v32 = vshrl.u32 %v48_v22, 16  ;;  %v57_v33 = vshrl.u32 %v49_v24, 16  ;;  %v58_v37 = vshrl.u32 %v50_v29, 16  ;;  %v59_v38 = vshrl.u32 %v51_v31, 16 }
  0x1d   :  { %v60_v43 = vshrl.u32 %v52_v35, 16  ;;  %v61_v47 = vshrl.u32 %v53_v40, 16  ;;  %v62_v52 = vshrl.u32 %v54_v44, 16  ;;  %v63_v0 = vshrl.u32 %v55_v56, 16 }
  0x1e   :  { %v64_v41 = vxor.u32 %v56_v32, %v48_v22  ;;  %v65_v42 = vxor.u32 %v57_v33, %v49_v24  ;;  %v66_v45 = vxor.u32 %v58_v37, %v50_v29  ;;  %v67_v46 = vxor.u32 %v59_v38, %v51_v31 }
  0x1f   :  { %v68_v51 = vxor.u32 %v60_v43, %v52_v35  ;;  %v69_v55 = vxor.u32 %v61_v47, %v53_v40  ;;  %v70_v60 = vxor.u32 %v62_v52, %v54_v44  ;;  %v71_v10 = vxor.u32 %v63_v0, %v55_v56 }
  0x20   :  { %v72_v49 = vmul.u32 2146121005, %v64_v41  ;;  %v73_v50 = vmul.u32 2146121005, %v65_v42  ;;  %v142_v17 = vmul.f32 2.0, %v134_v6 }
  0x21   :  { %v74_v53 = vmul.u32 2146121005, %v66_v45  ;;  %v75_v54 = vmul.u32 2146121005, %v67_v46 }
  0x22   :  { %v80_v57 = vshrl.u32 %v72_v49, 15  ;;  %v81_v58 = vshrl.u32 %v73_v50, 15  ;;  %v76_v59 = vmul.u32 2146121005, %v68_v51  ;;  %v77_v63 = vmul.u32 2146121005, %v69_v55 }
  0x23   :  { %v82_v61 = vshrl.u32 %v74_v53, 15  ;;  %v83_v62 = vshrl.u32 %v75_v54, 15  ;;  %v78_v5 = vmul.u32 2146121005, %v70_v60  ;;  %v79_v26 = vmul.u32 2146121005, %v71_v10 }
  0x24   :  { %v88_v1 = vxor.u32 %v80_v57, %v72_v49  ;;  %v89_v2 = vxor.u32 %v81_v58, %v73_v50  ;;  %v84_v4 = vshrl.u32 %v76_v59, 15  ;;  %v85_v9 = vshrl.u32 %v77_v63, 15  ;;  %v135_v50 = vld [vmem:[#allocation4 + $0x38] sm:$0xff] }
  0x25   :  { %v90_v7 = vxor.u32 %v82_v61, %v74_v53  ;;  %v91_v8 = vxor.u32 %v83_v62, %v75_v54  ;;  %v86_v13 = vshrl.u32 %v78_v5, 15  ;;  %v87_v37 = vshrl.u32 %v79_v26, 15 }
  0x26   :  { %v96_v11 = vmul.u32 2221713035, %v88_v1  ;;  %v97_v12 = vmul.u32 2221713035, %v89_v2  ;;  %v92_v3 = vxor.u32 %v84_v4, %v76_v59  ;;  %v93_v16 = vxor.u32 %v85_v9, %v77_v63 }
  0x27   :  { %v98_v14 = vmul.u32 2221713035, %v90_v7  ;;  %v99_v15 = vmul.u32 2221713035, %v91_v8  ;;  %v94_v21 = vxor.u32 %v86_v13, %v78_v5  ;;  %v95_v49 = vxor.u32 %v87_v37, %v79_v26 }
  0x28   :  { %v104_v18 = vshrl.u32 %v96_v11, 16  ;;  %v105_v19 = vshrl.u32 %v97_v12, 16  ;;  %v100_v20 = vmul.u32 2221713035, %v92_v3  ;;  %v101_v25 = vmul.u32 2221713035, %v93_v16 }
  0x29   :  { %v106_v22 = vshrl.u32 %v98_v14, 16  ;;  %v107_v24 = vshrl.u32 %v99_v15, 16  ;;  %v102_v32 = vmul.u32 2221713035, %v94_v21 }
  0x2a   :  { %v112_v27 = vxor.u32 %v104_v18, %v96_v11  ;;  %v113_v29 = vxor.u32 %v105_v19, %v97_v12  ;;  %v108_v31 = vshrl.u32 %v100_v20, 16  ;;  %v109_v36 = vshrl.u32 %v101_v25, 16 }
  0x2b   :  { %v114_v33 = vxor.u32 %v106_v22, %v98_v14  ;;  %v115_v35 = vxor.u32 %v107_v24, %v99_v15  ;;  %v110_v40 = vshrl.u32 %v102_v32, 16 }
  0x2c   :  { %vm120_vm0 = vcmp.ge.u32.totalorder %v112_v27, 2147483648  ;;  %vm121_vm1 = vcmp.ge.u32.totalorder %v113_v29, 2147483648  ;;  %v116_v38 = vxor.u32 %v108_v31, %v100_v20  ;;  %v117_v45 = vxor.u32 %v109_v36, %v101_v25 }
  0x2d   :  { %v144_v41 = vsel %vm120_vm0, %v257_v23, 0.0  ;;  %v145_v42 = vsel %vm121_vm1, %v259_v28, 0.0  ;;  %vm122_vm2 = vcmp.ge.u32.totalorder %v114_v33, 2147483648  ;;  %vm123_vm3 = vcmp.ge.u32.totalorder %v115_v35, 2147483648 }
  0x2e   :  { %152 = vst [vmem:[#allocation7] sm:$0xff] %v144_v41  ;;  %153 = vst [vmem:[#allocation7 + $0x8] sm:$0xff] %v145_v42  ;;  %v146_v43 = vsel %vm122_vm2, %v261_v30, 0.0  ;;  %v147_v44 = vsel %vm123_vm3, %v263_v34, 0.0  ;;  %vm124_vm4 = vcmp.ge.u32.totalorder %v116_v38, 2147483648  ;;  %v118_v47 = vxor.u32 %v110_v40, %v102_v32 }
  0x2f   :  { %154 = vst [vmem:[#allocation7 + $0x10] sm:$0xff] %v146_v43  ;;  %155 = vst [vmem:[#allocation7 + $0x18] sm:$0xff] %v147_v44  ;;  %v148_v46 = vsel %vm124_vm4, %v265_v39, 0.0  ;;  %vm125_vm5 = vcmp.ge.u32.totalorder %v117_v45, 2147483648  ;;  %v103_v28 = vmul.u32 2221713035, %v95_v49 }
  0x30   :  { %156 = vst [vmem:[#allocation7 + $0x20] sm:$0xff] %v148_v46  ;;  %v149_v23 = vsel %vm125_vm5, %v267_v48, 0.0  ;;  %vm126_vm6 = vcmp.ge.u32.totalorder %v118_v47, 2147483648  ;;  %v143_v34 = vmul.f32 2.0, %v135_v50 }
  0x31   :  { %157 = vst [vmem:[#allocation7 + $0x28] sm:$0xff] %v149_v23  ;;  %v150_v51 = vsel %vm126_vm6, %v142_v17, 0.0  ;;  %v111_v30 = vshrl.u32 %v103_v28, 16 }
  0x32   :  { %158 = vst [vmem:[#allocation7 + $0x30] sm:$0xff] %v150_v51 }
  0x33   :  { %v119_v52 = vxor.u32 %v111_v30, %v103_v28 }
  0x35   :  { %vm127_vm7 = vcmp.ge.u32.totalorder %v119_v52, 2147483648 }
  0x36   :  { %v151_v39 = vsel %vm127_vm7, %v143_v34, 0.0 }
  0x37   :  { %159 = vst [vmem:[#allocation7 + $0x38] sm:$0xff] %v151_v39 }
  0x38   :  { %210 = shalt.err (!%p207_p12)
}
  0x39   :  { %s211_s27 = scalar_lea.hbm %s289_s2, 1024 }
  0x3a   :  { %p212_p13 = scmp.ne.s32.totalorder %s289_s2, %s211_s27  ;;  %p215_p0 = scmp.lt.u32.totalorder %s211_s27, %s289_s2 }
  0x3c   :  { %p217_p1 = pnand %p215_p0, %p212_p13 }
  0x3e   :  { %220 = shalt.err (!%p217_p1)
}
  0x3f   :  { %169 = dma.vmem_to_hbm [thread:$0]  %s167_s1, 1024, %s289_s2, [#allocation6]  }
  0x40   :  { %223 = dma.done.wait [#allocation6], 1024  }
  0x41   :  { %224 = vsyncadd [#allocation6], 4294966272 }
  0x42   :  { %173 = vsyncpa [#allocation5], 1 }
  0x43   :  { %174 = vsyncpa [#allocation6], 1 }

</bundles_post_ra>
